<compile_context>
chip_gen: v7x
topology: tpu7x:2x2x1
jax: 0.10.0
libtpu: 0.0.40
codegen_flags: <defaults>
</compile_context>

<pallas_src>
import functools

import jax
import jax.numpy as jnp
from jax.experimental import pallas as pl
from jax.experimental.pallas import tpu as pltpu

EPS = 1e-5
LANE = 128


def _round_up(x, m):
    return (x + m - 1) // m * m


def _vmem_limit_bytes():
    try:
        cap = int(pltpu.get_tpu_info().vmem_capacity_bytes)
    except Exception:
        cap = 64 * 1024 * 1024  # conservative fallback (<= every gen's physical VMEM)
    return (3 * cap) // 4


# ------------------------------ Pallas kernel -------------------------------

def _fused_conv3x3_kernel(x_ref, w_ref, b_ref, *rest, taps, ho, wo, residual, relu):
    """One batch image per grid step.

    out = maybe_relu( sum_t win_t @ W_t + bias [+ residual] )

    refs:
      x_ref : (1, G, Hh, Ww, Cin)  bf16   padded / phase-split input
      w_ref : (9, Cin, Cout_p)     bf16   BN-scale-folded conv weight
      b_ref : (1, Cout_p)          f32    BN bias
      residual == "identity":   r_ref (1, M, Cout_p) f32
      residual == "projection": xs_ref (1, M, Cin0) bf16,
                                wsc_ref (Cin0, Cout_p) bf16, bsc_ref (1, Cout_p) f32
      o_ref : (1, M, Cout_p)       f32
    """
    if residual == "identity":
        r_ref, o_ref = rest
    elif residual == "projection":
        xs_ref, wsc_ref, bsc_ref, o_ref = rest
    else:
        (o_ref,) = rest

    m = ho * wo
    cp = o_ref.shape[-1]
    acc = jnp.zeros((m, cp), jnp.float32)

    # 9-tap accumulation: each tap is an unstrided static window of the prepared
    # input, fed straight to the MXU (bf16 in, f32 accumulate).  The window
    # reshape (ho, wo, C) -> (ho*wo, C) is layout-trivial when wo % 8 == 0.
    for t, (g, oh, ow) in enumerate(taps):
        win = x_ref[0, g, pl.ds(oh, ho), pl.ds(ow, wo), :]        # (ho, wo, Cin)
        a = win.reshape(m, win.shape[-1])                         # (M, Cin)
        acc = acc + jnp.dot(a, w_ref[t], preferred_element_type=jnp.float32)
    acc = acc + b_ref[...]

    if residual == "identity":
        acc = acc + r_ref[0]
    elif residual == "projection":
        acc = acc + jnp.dot(xs_ref[0], wsc_ref[...],
                            preferred_element_type=jnp.float32) + bsc_ref[...]

    if relu:
        acc = jnp.maximum(acc, 0.0)
    o_ref[0] = acc.astype(o_ref.dtype)


# ------------------------------- JAX wrappers --------------------------------

def _prep_conv_input(x_nhwc, stride):
    """Zero-pad (pad=1) and, for stride>1, split into stride^2 phase planes so
    every 3x3 tap window becomes an unstrided static slice inside the kernel.

    Returns prep (N, G, Hh, Ww, C), 9 static taps (g, row_off, col_off) in
    (dh, dw) row-major order, and the conv output size (ho, wo)."""
    n, h, w, c = x_nhwc.shape
    ho = (h + 2 - 3) // stride + 1
    wo = (w + 2 - 3) // stride + 1
    xp = jnp.pad(x_nhwc, ((0, 0), (1, 1), (1, 1), (0, 0)))
    if stride == 1:
        taps = [(0, dh, dw) for dh in range(3) for dw in range(3)]
        return xp[:, None], taps, ho, wo

    moff = 2 // stride                              # max per-phase window offset
    hh, ww = ho + moff, wo + moff
    planes = []
    for a in range(stride):
        for b in range(stride):
            p = xp[:, a::stride, b::stride, :][:, :hh, :ww, :]
            pad_h, pad_w = hh - p.shape[1], ww - p.shape[2]
            if pad_h or pad_w:                       # never read by valid taps
                p = jnp.pad(p, ((0, 0), (0, pad_h), (0, pad_w), (0, 0)))
            planes.append(p)
    prep = jnp.stack(planes, axis=1)                # (N, s*s, hh, ww, C)
    taps = [((dh % stride) * stride + (dw % stride), dh // stride, dw // stride)
            for dh in range(3) for dw in range(3)]
    return prep, taps, ho, wo


def _fold_bn(gamma, beta, mean, var):
    scale = gamma / jnp.sqrt(var + EPS)
    return scale, beta - mean * scale


def _prep_w3x3(w_oihw, gamma, beta, mean, var, cin_p, cout_p):
    """(Cout,Cin,3,3) -> (9, cin_p, cout_p) bf16 with BN scale folded, plus
    (1, cout_p) f32 bias.  Tap ordering matches _prep_conv_input."""
    cout, cin, _, _ = w_oihw.shape
    scale, bias = _fold_bn(gamma, beta, mean, var)
    w = jnp.transpose(w_oihw, (2, 3, 1, 0)).reshape(9, cin, cout) * scale[None, None, :]
    w = jnp.pad(w, ((0, 0), (0, cin_p - cin), (0, cout_p - cout)))
    b = jnp.pad(bias, (0, cout_p - cout))
    return w.astype(jnp.bfloat16), b.astype(jnp.float32)[None, :]


def _conv_block(prep, w9, bias, taps, ho, wo, *, relu, residual=None, res_args=()):
    n, g, hh, ww, cin = prep.shape
    cp = w9.shape[-1]
    m = ho * wo

    kernel = functools.partial(_fused_conv3x3_kernel, taps=tuple(taps),
                               ho=ho, wo=wo, residual=residual, relu=relu)

    in_specs = [
        pl.BlockSpec((1, g, hh, ww, cin), lambda i: (i, 0, 0, 0, 0)),
        pl.BlockSpec(w9.shape, lambda i: (0, 0, 0)),
        pl.BlockSpec(bias.shape, lambda i: (0, 0)),
    ]
    args = [prep, w9, bias]
    if residual == "identity":
        (r,) = res_args                               # (N, M, cp) f32
        in_specs.append(pl.BlockSpec((1, m, cp), lambda i: (i, 0, 0)))
        args.append(r)
    elif residual == "projection":
        xs, wsc, bsc = res_args
        in_specs += [
            pl.BlockSpec((1, m, xs.shape[-1]), lambda i: (i, 0, 0)),
            pl.BlockSpec(wsc.shape, lambda i: (0, 0)),
            pl.BlockSpec(bsc.shape, lambda i: (0, 0)),
        ]
        args += [xs, wsc, bsc]

    return pl.pallas_call(
        kernel,
        out_shape=jax.ShapeDtypeStruct((n, m, cp), jnp.float32),
        grid=(n,),
        in_specs=in_specs,
        out_specs=pl.BlockSpec((1, m, cp), lambda i: (i, 0, 0)),
        compiler_params=pltpu.CompilerParams(
            dimension_semantics=("parallel",),
            vmem_limit_bytes=_vmem_limit_bytes(),
        ),
    )(*args)


def basic_block_forward(x_nchw, params, stride):
    n, cin, h, w = x_nchw.shape
    planes = params["w1"].shape[0]
    cp = _round_up(planes, LANE)                      # lane-dense output channels

    x = jnp.transpose(x_nchw, (0, 2, 3, 1)).astype(jnp.float32)   # NHWC

    # ---- conv1 (3x3, stride) + bn1 + relu, fused in one kernel ----
    prep1, taps1, ho, wo = _prep_conv_input(x.astype(jnp.bfloat16), stride)
    w1, b1 = _prep_w3x3(params["w1"], params["bn1_gamma"], params["bn1_beta"],
                        params["bn1_mean"], params["bn1_var"], cin, cp)
    out1 = _conv_block(prep1, w1, b1, taps1, ho, wo, relu=True)   # (N, M, cp) f32
    m = ho * wo

    # ---- shortcut operands (fused into the conv2 kernel) ----
    if stride != 1 or cin != planes:
        s_sc, bias_sc = _fold_bn(params["bnsc_gamma"], params["bnsc_beta"],
                                 params["bnsc_mean"], params["bnsc_var"])
        wsc = params["w_sc"].reshape(planes, cin).T * s_sc[None, :]     # (Cin, planes)
        wsc = jnp.pad(wsc, ((0, 0), (0, cp - planes))).astype(jnp.bfloat16)
        bsc = jnp.pad(bias_sc, (0, cp - planes)).astype(jnp.float32)[None, :]
        xs = x[:, ::stride, ::stride, :][:, :ho, :wo, :]
        xs = xs.reshape(n, m, cin).astype(jnp.bfloat16)
        residual, res_args = "projection", (xs, wsc, bsc)
    else:
        xid = jnp.pad(x, ((0, 0), (0, 0), (0, 0), (0, cp - cin)))
        residual, res_args = "identity", (xid.reshape(n, m, cp),)

    # ---- conv2 (3x3, stride 1) + bn2 + shortcut add + relu, fully fused ----
    out1_img = out1.reshape(n, ho, wo, cp).astype(jnp.bfloat16)   # lane-dense NHWC
    prep2, taps2, ho2, wo2 = _prep_conv_input(out1_img, 1)
    w2, b2 = _prep_w3x3(params["w2"], params["bn2_gamma"], params["bn2_beta"],
                        params["bn2_mean"], params["bn2_var"], cp, cp)
    out = _conv_block(prep2, w2, b2, taps2, ho2, wo2, relu=True,
                      residual=residual, res_args=res_args)       # (N, M, cp) f32

    out = out[:, :, :planes].reshape(n, ho, wo, planes)
    return jnp.transpose(out, (0, 3, 1, 2))                        # back to NCHW


# ------------------------------ references ----------------------------------

def _ref_forward_f32(x, p, stride):
    """Exact f32 reference matching the PyTorch module (inference-mode BN)."""
    def conv(x, w, s, pad):
        return jax.lax.conv_general_dilated(
            x, w, (s, s), ((pad, pad), (pad, pad)),
            dimension_numbers=("NCHW", "OIHW", "NCHW"))

    def bn(x, g, b, m, v):
        sc = g / jnp.sqrt(v + EPS)
        return x * sc[None, :, None, None] + (b - m * sc)[None, :, None, None]

    out = jax.nn.relu(bn(conv(x, p["w1"], stride, 1),
                         p["bn1_gamma"], p["bn1_beta"], p["bn1_mean"], p["bn1_var"]))
    out = bn(conv(out, p["w2"], 1, 1),
             p["bn2_gamma"], p["bn2_beta"], p["bn2_mean"], p["bn2_var"])
    if stride != 1 or x.shape[1] != p["w1"].shape[0]:
        sc = bn(conv(x, p["w_sc"], stride, 0),
                p["bnsc_gamma"], p["bnsc_beta"], p["bnsc_mean"], p["bnsc_var"])
    else:
        sc = x
    return jax.nn.relu(out + sc)


def _ref_forward_bf16(x, p, stride):
    """Reference with the same bf16 quantization points as the Pallas path
    (BN scale folded into weights, bf16 MXU operands, f32 accumulation)."""
    def convq(x, w, s, pad):
        return jax.lax.conv_general_dilated(
            x.astype(jnp.bfloat16), w.astype(jnp.bfloat16), (s, s),
            ((pad, pad), (pad, pad)),
            dimension_numbers=("NCHW", "OIHW", "NCHW"),
            preferred_element_type=jnp.float32)

    def fold(g, b, m, v):
        sc = g / jnp.sqrt(v + EPS)
        return sc, b - m * sc

    s1, b1 = fold(p["bn1_gamma"], p["bn1_beta"], p["bn1_mean"], p["bn1_var"])
    out = jax.nn.relu(convq(x, p["w1"] * s1[:, None, None, None], stride, 1)
                      + b1[None, :, None, None])
    s2, b2 = fold(p["bn2_gamma"], p["bn2_beta"], p["bn2_mean"], p["bn2_var"])
    out = convq(out, p["w2"] * s2[:, None, None, None], 1, 1) + b2[None, :, None, None]
    if stride != 1 or x.shape[1] != p["w1"].shape[0]:
        ss, bs = fold(p["bnsc_gamma"], p["bnsc_beta"], p["bnsc_mean"], p["bnsc_var"])
        sc = convq(x, p["w_sc"] * ss[:, None, None, None], stride, 0) \
            + bs[None, :, None, None]
    else:
        sc = x
    return jax.nn.relu(out + sc)


# ---------------------------------- main -------------------------------------

def _init_params(key, in_planes, planes, stride):
    ks = jax.random.split(key, 16)
    f32 = jnp.float32

    def bn_params(k0, k1, k2, k3, c):
        return (1.0 + 0.1 * jax.random.normal(k0, (c,), f32),
                0.1 * jax.random.normal(k1, (c,), f32),
                0.1 * jax.random.normal(k2, (c,), f32),
                0.5 + jnp.abs(jax.random.normal(k3, (c,), f32)))

    p = {}
    p["w1"] = 0.1 * jax.random.normal(ks[0], (planes, in_planes, 3, 3), f32)
    (p["bn1_gamma"], p["bn1_beta"], p["bn1_mean"], p["bn1_var"]) = bn_params(
        ks[1], ks[2], ks[3], ks[4], planes)
    p["w2"] = 0.1 * jax.random.normal(ks[5], (planes, planes, 3, 3), f32)
    (p["bn2_gamma"], p["bn2_beta"], p["bn2_mean"], p["bn2_var"]) = bn_params(
        ks[6], ks[7], ks[8], ks[9], planes)
    if stride != 1 or in_planes != planes:
        p["w_sc"] = 0.1 * jax.random.normal(ks[10], (planes, in_planes, 1, 1), f32)
        (p["bnsc_gamma"], p["bnsc_beta"], p["bnsc_mean"], p["bnsc_var"]) = bn_params(
            ks[11], ks[12], ks[13], ks[14], planes)
    return p


def _run_case(key, batch, in_planes, planes, hw, stride):
    k_x, k_p = jax.random.split(key)
    x = jax.random.normal(k_x, (batch, in_planes, hw, hw), jnp.float32)
    params = _init_params(k_p, in_planes, planes, stride)

    out = jax.block_until_ready(basic_block_forward(x, params, stride))
    ref_q = jax.block_until_ready(_ref_forward_bf16(x, params, stride))
    ref_f = jax.block_until_ready(_ref_forward_f32(x, params, stride))

    assert out.shape == ref_f.shape, (out.shape, ref_f.shape)
    # Tight check vs a reference with identical bf16 quantization points.
    assert jnp.allclose(out, ref_q, atol=2e-2, rtol=2e-2), \
        float(jnp.max(jnp.abs(out - ref_q)))
    # Looser check vs the exact f32 module semantics (kernel uses bf16 MXU inputs).
    assert jnp.allclose(out, ref_f, atol=1e-1, rtol=1e-1), \
        float(jnp.max(jnp.abs(out - ref_f)))


if __name__ == "__main__":
    key = jax.random.PRNGKey(0)
    k1, k2 = jax.random.split(key)

    # Downsampling block: stride 2 + 1x1-conv projection shortcut (fused).
    _run_case(k1, batch=2, in_planes=4, planes=8, hw=16, stride=2)
    # Identity block: stride 1, same channel count (fused identity residual).
    _run_case(k2, batch=2, in_planes=8, planes=8, hw=8, stride=1)

    print("KERNEL_OK")
</pallas_src>

<mosaic_0001>
module attributes {stable_mosaic.version = 11 : i64} {
  func.func @_fused_conv3x3_kernel(%arg0: i32, %arg1: memref<1x4x9x9x4xbf16, #tpu.memory_space<vmem>>, %arg2: memref<9x4x128xbf16, #tpu.memory_space<vmem>>, %arg3: memref<1x128xf32, #tpu.memory_space<vmem>>, %arg4: memref<1x64x128xf32, #tpu.memory_space<vmem>>) attributes {dimension_semantics = [#tpu.dimension_semantics<parallel>], iteration_bounds = array<i64: 2>, scalar_prefetch = 0 : i64, scratch_operands = 0 : i64, tpu.core_type = #tpu.core_type<tc>, window_params = [{transform_indices = @transform_0, window_bounds = array<i64: 1, 4, 9, 9, 4>}, {pipeline_mode = #tpu.pipeline_mode<synchronous>, transform_indices = @transform_1, window_bounds = array<i64: 9, 4, 128>}, {pipeline_mode = #tpu.pipeline_mode<synchronous>, transform_indices = @transform_2, window_bounds = array<i64: 1, 128>}, {transform_indices = @transform_3, window_bounds = array<i64: 1, 64, 128>}]} {
    %cst = arith.constant 0.000000e+00 : f32
    %0 = vector.broadcast %cst : f32 to vector<64x128xf32>
    %c0 = arith.constant 0 : index
    %c0_0 = arith.constant 0 : index
    %c0_1 = arith.constant 0 : index
    %c0_2 = arith.constant 0 : index
    %c0_3 = arith.constant 0 : index
    %1 = vector.load %arg1[%c0, %c0_0, %c0_1, %c0_2, %c0_3] : memref<1x4x9x9x4xbf16, #tpu.memory_space<vmem>>, vector<1x1x8x8x4xbf16>
    %2 = vector.shape_cast %1 : vector<1x1x8x8x4xbf16> to vector<8x8x4xbf16>
    %3 = vector.shape_cast %2 : vector<8x8x4xbf16> to vector<64x4xbf16>
    %c0_4 = arith.constant 0 : index
    %c0_5 = arith.constant 0 : index
    %c0_6 = arith.constant 0 : index
    %4 = vector.load %arg2[%c0_4, %c0_5, %c0_6] : memref<9x4x128xbf16, #tpu.memory_space<vmem>>, vector<1x4x128xbf16>
    %5 = vector.shape_cast %4 : vector<1x4x128xbf16> to vector<4x128xbf16>
    %cst_7 = arith.constant dense<0.000000e+00> : vector<64x128xf32>
    %6 = tpu.matmul %3, %5, %cst_7 {dimension_numbers = #tpu.dot_dimension_numbers<[1], [0], [0], [1], [0, 0, 1, 1], [], []>} : vector<64x4xbf16>, vector<4x128xbf16>, vector<64x128xf32> -> vector<64x128xf32>
    %7 = arith.addf %0, %6 : vector<64x128xf32>
    %c0_8 = arith.constant 0 : index
    %c1 = arith.constant 1 : index
    %c0_9 = arith.constant 0 : index
    %c0_10 = arith.constant 0 : index
    %c0_11 = arith.constant 0 : index
    %8 = vector.load %arg1[%c0_8, %c1, %c0_9, %c0_10, %c0_11] : memref<1x4x9x9x4xbf16, #tpu.memory_space<vmem>>, vector<1x1x8x8x4xbf16>
    %9 = vector.shape_cast %8 : vector<1x1x8x8x4xbf16> to vector<8x8x4xbf16>
    %10 = vector.shape_cast %9 : vector<8x8x4xbf16> to vector<64x4xbf16>
    %c1_12 = arith.constant 1 : index
    %c0_13 = arith.constant 0 : index
    %c0_14 = arith.constant 0 : index
    %11 = vector.load %arg2[%c1_12, %c0_13, %c0_14] : memref<9x4x128xbf16, #tpu.memory_space<vmem>>, vector<1x4x128xbf16>
    %12 = vector.shape_cast %11 : vector<1x4x128xbf16> to vector<4x128xbf16>
    %cst_15 = arith.constant dense<0.000000e+00> : vector<64x128xf32>
    %13 = tpu.matmul %10, %12, %cst_15 {dimension_numbers = #tpu.dot_dimension_numbers<[1], [0], [0], [1], [0, 0, 1, 1], [], []>} : vector<64x4xbf16>, vector<4x128xbf16>, vector<64x128xf32> -> vector<64x128xf32>
    %14 = arith.addf %7, %13 : vector<64x128xf32>
    %c0_16 = arith.constant 0 : index
    %c0_17 = arith.constant 0 : index
    %c0_18 = arith.constant 0 : index
    %c1_19 = arith.constant 1 : index
    %c0_20 = arith.constant 0 : index
    %15 = vector.load %arg1[%c0_16, %c0_17, %c0_18, %c1_19, %c0_20] : memref<1x4x9x9x4xbf16, #tpu.memory_space<vmem>>, vector<1x1x8x8x4xbf16>
    %16 = vector.shape_cast %15 : vector<1x1x8x8x4xbf16> to vector<8x8x4xbf16>
    %17 = vector.shape_cast %16 : vector<8x8x4xbf16> to vector<64x4xbf16>
    %c2 = arith.constant 2 : index
    %c0_21 = arith.constant 0 : index
    %c0_22 = arith.constant 0 : index
    %18 = vector.load %arg2[%c2, %c0_21, %c0_22] : memref<9x4x128xbf16, #tpu.memory_space<vmem>>, vector<1x4x128xbf16>
    %19 = vector.shape_cast %18 : vector<1x4x128xbf16> to vector<4x128xbf16>
    %cst_23 = arith.constant dense<0.000000e+00> : vector<64x128xf32>
    %20 = tpu.matmul %17, %19, %cst_23 {dimension_numbers = #tpu.dot_dimension_numbers<[1], [0], [0], [1], [0, 0, 1, 1], [], []>} : vector<64x4xbf16>, vector<4x128xbf16>, vector<64x128xf32> -> vector<64x128xf32>
    %21 = arith.addf %14, %20 : vector<64x128xf32>
    %c0_24 = arith.constant 0 : index
    %c2_25 = arith.constant 2 : index
    %c0_26 = arith.constant 0 : index
    %c0_27 = arith.constant 0 : index
    %c0_28 = arith.constant 0 : index
    %22 = vector.load %arg1[%c0_24, %c2_25, %c0_26, %c0_27, %c0_28] : memref<1x4x9x9x4xbf16, #tpu.memory_space<vmem>>, vector<1x1x8x8x4xbf16>
    %23 = vector.shape_cast %22 : vector<1x1x8x8x4xbf16> to vector<8x8x4xbf16>
    %24 = vector.shape_cast %23 : vector<8x8x4xbf16> to vector<64x4xbf16>
    %c3 = arith.constant 3 : index
    %c0_29 = arith.constant 0 : index
    %c0_30 = arith.constant 0 : index
    %25 = vector.load %arg2[%c3, %c0_29, %c0_30] : memref<9x4x128xbf16, #tpu.memory_space<vmem>>, vector<1x4x128xbf16>
    %26 = vector.shape_cast %25 : vector<1x4x128xbf16> to vector<4x128xbf16>
    %cst_31 = arith.constant dense<0.000000e+00> : vector<64x128xf32>
    %27 = tpu.matmul %24, %26, %cst_31 {dimension_numbers = #tpu.dot_dimension_numbers<[1], [0], [0], [1], [0, 0, 1, 1], [], []>} : vector<64x4xbf16>, vector<4x128xbf16>, vector<64x128xf32> -> vector<64x128xf32>
    %28 = arith.addf %21, %27 : vector<64x128xf32>
    %c0_32 = arith.constant 0 : index
    %c3_33 = arith.constant 3 : index
    %c0_34 = arith.constant 0 : index
    %c0_35 = arith.constant 0 : index
    %c0_36 = arith.constant 0 : index
    %29 = vector.load %arg1[%c0_32, %c3_33, %c0_34, %c0_35, %c0_36] : memref<1x4x9x9x4xbf16, #tpu.memory_space<vmem>>, vector<1x1x8x8x4xbf16>
    %30 = vector.shape_cast %29 : vector<1x1x8x8x4xbf16> to vector<8x8x4xbf16>
    %31 = vector.shape_cast %30 : vector<8x8x4xbf16> to vector<64x4xbf16>
    %c4 = arith.constant 4 : index
    %c0_37 = arith.constant 0 : index
    %c0_38 = arith.constant 0 : index
    %32 = vector.load %arg2[%c4, %c0_37, %c0_38] : memref<9x4x128xbf16, #tpu.memory_space<vmem>>, vector<1x4x128xbf16>
    %33 = vector.shape_cast %32 : vector<1x4x128xbf16> to vector<4x128xbf16>
    %cst_39 = arith.constant dense<0.000000e+00> : vector<64x128xf32>
    %34 = tpu.matmul %31, %33, %cst_39 {dimension_numbers = #tpu.dot_dimension_numbers<[1], [0], [0], [1], [0, 0, 1, 1], [], []>} : vector<64x4xbf16>, vector<4x128xbf16>, vector<64x128xf32> -> vector<64x128xf32>
    %35 = arith.addf %28, %34 : vector<64x128xf32>
    %c0_40 = arith.constant 0 : index
    %c2_41 = arith.constant 2 : index
    %c0_42 = arith.constant 0 : index
    %c1_43 = arith.constant 1 : index
    %c0_44 = arith.constant 0 : index
    %36 = vector.load %arg1[%c0_40, %c2_41, %c0_42, %c1_43, %c0_44] : memref<1x4x9x9x4xbf16, #tpu.memory_space<vmem>>, vector<1x1x8x8x4xbf16>
    %37 = vector.shape_cast %36 : vector<1x1x8x8x4xbf16> to vector<8x8x4xbf16>
    %38 = vector.shape_cast %37 : vector<8x8x4xbf16> to vector<64x4xbf16>
    %c5 = arith.constant 5 : index
    %c0_45 = arith.constant 0 : index
    %c0_46 = arith.constant 0 : index
    %39 = vector.load %arg2[%c5, %c0_45, %c0_46] : memref<9x4x128xbf16, #tpu.memory_space<vmem>>, vector<1x4x128xbf16>
    %40 = vector.shape_cast %39 : vector<1x4x128xbf16> to vector<4x128xbf16>
    %cst_47 = arith.constant dense<0.000000e+00> : vector<64x128xf32>
    %41 = tpu.matmul %38, %40, %cst_47 {dimension_numbers = #tpu.dot_dimension_numbers<[1], [0], [0], [1], [0, 0, 1, 1], [], []>} : vector<64x4xbf16>, vector<4x128xbf16>, vector<64x128xf32> -> vector<64x128xf32>
    %42 = arith.addf %35, %41 : vector<64x128xf32>
    %c0_48 = arith.constant 0 : index
    %c0_49 = arith.constant 0 : index
    %c1_50 = arith.constant 1 : index
    %c0_51 = arith.constant 0 : index
    %c0_52 = arith.constant 0 : index
    %43 = vector.load %arg1[%c0_48, %c0_49, %c1_50, %c0_51, %c0_52] : memref<1x4x9x9x4xbf16, #tpu.memory_space<vmem>>, vector<1x1x8x8x4xbf16>
    %44 = vector.shape_cast %43 : vector<1x1x8x8x4xbf16> to vector<8x8x4xbf16>
    %45 = vector.shape_cast %44 : vector<8x8x4xbf16> to vector<64x4xbf16>
    %c6 = arith.constant 6 : index
    %c0_53 = arith.constant 0 : index
    %c0_54 = arith.constant 0 : index
    %46 = vector.load %arg2[%c6, %c0_53, %c0_54] : memref<9x4x128xbf16, #tpu.memory_space<vmem>>, vector<1x4x128xbf16>
    %47 = vector.shape_cast %46 : vector<1x4x128xbf16> to vector<4x128xbf16>
    %cst_55 = arith.constant dense<0.000000e+00> : vector<64x128xf32>
    %48 = tpu.matmul %45, %47, %cst_55 {dimension_numbers = #tpu.dot_dimension_numbers<[1], [0], [0], [1], [0, 0, 1, 1], [], []>} : vector<64x4xbf16>, vector<4x128xbf16>, vector<64x128xf32> -> vector<64x128xf32>
    %49 = arith.addf %42, %48 : vector<64x128xf32>
    %c0_56 = arith.constant 0 : index
    %c1_57 = arith.constant 1 : index
    %c1_58 = arith.constant 1 : index
    %c0_59 = arith.constant 0 : index
    %c0_60 = arith.constant 0 : index
    %50 = vector.load %arg1[%c0_56, %c1_57, %c1_58, %c0_59, %c0_60] : memref<1x4x9x9x4xbf16, #tpu.memory_space<vmem>>, vector<1x1x8x8x4xbf16>
    %51 = vector.shape_cast %50 : vector<1x1x8x8x4xbf16> to vector<8x8x4xbf16>
    %52 = vector.shape_cast %51 : vector<8x8x4xbf16> to vector<64x4xbf16>
    %c7 = arith.constant 7 : index
    %c0_61 = arith.constant 0 : index
    %c0_62 = arith.constant 0 : index
    %53 = vector.load %arg2[%c7, %c0_61, %c0_62] : memref<9x4x128xbf16, #tpu.memory_space<vmem>>, vector<1x4x128xbf16>
    %54 = vector.shape_cast %53 : vector<1x4x128xbf16> to vector<4x128xbf16>
    %cst_63 = arith.constant dense<0.000000e+00> : vector<64x128xf32>
    %55 = tpu.matmul %52, %54, %cst_63 {dimension_numbers = #tpu.dot_dimension_numbers<[1], [0], [0], [1], [0, 0, 1, 1], [], []>} : vector<64x4xbf16>, vector<4x128xbf16>, vector<64x128xf32> -> vector<64x128xf32>
    %56 = arith.addf %49, %55 : vector<64x128xf32>
    %c0_64 = arith.constant 0 : index
    %c0_65 = arith.constant 0 : index
    %c1_66 = arith.constant 1 : index
    %c1_67 = arith.constant 1 : index
    %c0_68 = arith.constant 0 : index
    %57 = vector.load %arg1[%c0_64, %c0_65, %c1_66, %c1_67, %c0_68] : memref<1x4x9x9x4xbf16, #tpu.memory_space<vmem>>, vector<1x1x8x8x4xbf16>
    %58 = vector.shape_cast %57 : vector<1x1x8x8x4xbf16> to vector<8x8x4xbf16>
    %59 = vector.shape_cast %58 : vector<8x8x4xbf16> to vector<64x4xbf16>
    %c8 = arith.constant 8 : index
    %c0_69 = arith.constant 0 : index
    %c0_70 = arith.constant 0 : index
    %60 = vector.load %arg2[%c8, %c0_69, %c0_70] : memref<9x4x128xbf16, #tpu.memory_space<vmem>>, vector<1x4x128xbf16>
    %61 = vector.shape_cast %60 : vector<1x4x128xbf16> to vector<4x128xbf16>
    %cst_71 = arith.constant dense<0.000000e+00> : vector<64x128xf32>
    %62 = tpu.matmul %59, %61, %cst_71 {dimension_numbers = #tpu.dot_dimension_numbers<[1], [0], [0], [1], [0, 0, 1, 1], [], []>} : vector<64x4xbf16>, vector<4x128xbf16>, vector<64x128xf32> -> vector<64x128xf32>
    %63 = arith.addf %56, %62 : vector<64x128xf32>
    %c0_72 = arith.constant 0 : index
    %c0_73 = arith.constant 0 : index
    %64 = vector.load %arg3[%c0_72, %c0_73] : memref<1x128xf32, #tpu.memory_space<vmem>>, vector<1x128xf32>
    %65 = vector.broadcast %64 : vector<1x128xf32> to vector<64x128xf32>
    %66 = arith.addf %63, %65 : vector<64x128xf32>
    %cst_74 = arith.constant 0.000000e+00 : f32
    %67 = vector.broadcast %cst_74 : f32 to vector<64x128xf32>
    %68 = arith.maximumf %66, %67 : vector<64x128xf32>
    %c0_75 = arith.constant 0 : index
    %c0_76 = arith.constant 0 : index
    %c0_77 = arith.constant 0 : index
    %69 = vector.load %arg4[%c0_75, %c0_76, %c0_77] : memref<1x64x128xf32, #tpu.memory_space<vmem>>, vector<1x64x128xf32>
    %70 = vector.shape_cast %69 : vector<1x64x128xf32> to vector<64x128xf32>
    %71 = vector.shape_cast %68 : vector<64x128xf32> to vector<1x64x128xf32>
    tpu.vector_store %arg4[%c0_75, %c0_76, %c0_77], %71 {strides = array<i32>} : memref<1x64x128xf32, #tpu.memory_space<vmem>>, vector<1x64x128xf32>,
    return
  }
  func.func @transform_0(%arg0: i32) -> (i32, i32, i32, i32, i32) {
    %c0_i32 = arith.constant 0 : i32
    %c0_i32_0 = arith.constant 0 : i32
    %c0_i32_1 = arith.constant 0 : i32
    %c0_i32_2 = arith.constant 0 : i32
    %c0_i32_3 = arith.constant 0 : i32
    return %arg0, %c0_i32, %c0_i32_0, %c0_i32_1, %c0_i32_2 : i32, i32, i32, i32, i32
  }
  func.func @transform_1(%arg0: i32) -> (i32, i32, i32) {
    %c0_i32 = arith.constant 0 : i32
    %c0_i32_0 = arith.constant 0 : i32
    %c0_i32_1 = arith.constant 0 : i32
    %c0_i32_2 = arith.constant 0 : i32
    return %c0_i32, %c0_i32_0, %c0_i32_1 : i32, i32, i32
  }
  func.func @transform_2(%arg0: i32) -> (i32, i32) {
    %c0_i32 = arith.constant 0 : i32
    %c0_i32_0 = arith.constant 0 : i32
    %c0_i32_1 = arith.constant 0 : i32
    return %c0_i32, %c0_i32_0 : i32, i32
  }
  func.func @transform_3(%arg0: i32) -> (i32, i32, i32) {
    %c0_i32 = arith.constant 0 : i32
    %c0_i32_0 = arith.constant 0 : i32
    %c0_i32_1 = arith.constant 0 : i32
    return %arg0, %c0_i32, %c0_i32_0 : i32, i32, i32
  }
}

</mosaic_0001>

<bundles_post_ra>
// kernel: tpu_custom_call.1
= control target key start
LH: loop header
LB: loop body
LE: loop exit
PB: predicated region body
PF: predicated region fallthrough
CT: control target
= control target key end

     0   :  { %8 = vsyncpa [#allocation3], 0  ;;  %s2555_s0 = inlined_call_operand.vmem [shape: bf16[2,4,9,9,4], index: 0, kind: input, shape index: {}]   ;;  %s2556_s1 = inlined_call_operand.vmem [shape: bf16[9,4,128], index: 1, kind: input, shape index: {}]   ;;  %s2557_s2 = inlined_call_operand.vmem [shape: f32[1,128], index: 2, kind: input, shape index: {}]   ;;  %s2558_s3 = inlined_call_operand.hbm [shape: f32[2,64,128], index: 3, kind: output, shape index: {}]  }
   0x1   :  { %10 = vsyncpa [#allocation3 + $0x1], 0  ;;  %s2197_s12 = smov 0   ;;  %s2199_s13 = smov 0  }
   0x2   :  { %s2201_s14 = smov 0   ;;  %s2203_s15 = smov 0  }
   0x3 LB: > { %s2218_s16 = sadd.s32 4294967295, %s2172_s15   ;;  %s1668_s17 = sadd.s32 4294967294, %s2172_s15   ;;  %s2172_s15 = sphi %s2203_s15, %s2566_s15   ;;  %s2168_s14 = sphi %s2201_s14, %s2565_s14   ;;  %s2164_s13 = sphi %s2199_s13, %s2564_s13   ;;  %s2160_s12 = sphi %s2197_s12, %s2563_s12  }
   0x4   : > { %s2222_s18 = sadd.s32 1, %s2172_s15   ;;  %s91_s19 = sadd.s32 1, %s2168_s14 }
   0x5   : > { %s88_s20 = ssub.s32 %s2172_s15, %s2222_s18  ;;  %p101_p0 = scmp.ne.s32.totalorder %s2168_s14, %s2164_s13 }
   0x6   : > { %p89_p1 = scmp.eq.s32.totalorder %s88_s20, 0  ;;  %p102_p2 = scmp.eq.s32.totalorder %s2218_s16, 1 }
   0x7   : > { %p107_p3 = scmp.ne.s32.totalorder %s2164_s13, %s2160_s12  ;;  %p108_p4 = scmp.eq.s32.totalorder %s1668_s17, 1 }
   0x8   : > { %s2233_s21 = scalar_select %p89_p1, %s2168_s14, %s91_s19  }
   0x9   : > { %p2235_p5 = por %p102_p2, %p101_p0  ;;  %p2239_p6 = por %p108_p4, %p107_p3 }
   0xa   : > { %p1671_p7 = scmp.ge.s32.totalorder %s2172_s15, 1  ;;  %p140_p8 = scmp.lt.s32.totalorder %s2172_s15, 3 }
   0xc   : > { %p141_p9 = pnand %p1671_p7, %p140_p8 }
   0xd   : > { %v1682_v0 = vld [vmem:[%s2556_s1 + $0x2] sm:$0x3] (!%p141_p9)  ;;  %vm223_vm0 = vcmask (!%p141_p9), 1041408   ;;  %v2251_v1 = vld [vmem:[%s2556_s1 + $0x8] sm:$0x3] (!%p141_p9)  ;;  %p164_p10 = scmp.lt.s32.totalorder (!%p141_p9), %s2218_s16, 1 }
   0xe   : > { %144 = sbr.rel (%p141_p9) target bundleno = 339 (0x153), region = 32  ;;  %2034 = vmatprep.subr.msk.bf16.mxu1 (!%p141_p9), %vm223_vm0, %v1682_v0  ;;  %2038 = vmatprep.subr.msk.bf16.mxu0 (!%p141_p9), %vm223_vm0, %v2251_v1  ;;  %v225_v2 = vsel (!%p141_p9), %vm223_vm0, %v1682_v0, 0  ;;  %v2260_v3 = vsel (!%p141_p9), %vm223_vm0, %v2251_v1, 0  ;;  %v178_v4 = vld [vmem:[%s2556_s1] sm:$0x3] (!%p141_p9)  ;;  %vm210_vm1 = vcmask (!%p141_p9), 31744  }
   0xf   : > { %1879 = vmatpush3.bf16.msra.mxu1 (!%p141_p9), %v225_v2  ;;  %1919 = vmatpush3.bf16.msra.mxu0 (!%p141_p9), %v2260_v3  ;;  %v1758_v5 = vld [vmem:[%s2556_s1 + $0xa] sm:$0x3] (!%p141_p9)  ;;  %v325_v6 = vsel (!%p141_p9), %vm223_vm0, %v178_v4, 0  ;;  %v1775_v9 = vld [vmem:[%s2556_s1 + $0xc] sm:$0x3] (!%p141_p9)  ;;  %s161_s29 = sand.u32 (!%p141_p9), 1, %s2164_s13  }
  0x10   : > { %2035 = vmatprep.subr.msk.bf16.mxu1 (!%p141_p9), %vm223_vm0, %v178_v4  ;;  %2040 = vmatprep.subr.msk.bf16.mxu0 (!%p141_p9), %vm223_vm0, %v1758_v5  ;;  %v1018_v7 = vsel (!%p141_p9), %vm223_vm0, %v1758_v5, 0  ;;  %v1699_v10 = vld [vmem:[%s2556_s1 + $0x4] sm:$0x3] (!%p141_p9)  ;;  %vm408_vm2 = vsmask.f32 (!%p141_p9), 3328  ;;  %v2295_v15 = vsel (!%p141_p9), %vm223_vm0, %v1775_v9, 0 }
  0x11   : > { %vm409_vm3 = vsmask.f32 (!%p141_p9), 7440  ;;  %v2298_v16 = vsel (!%p141_p9), %vm223_vm0, %v1699_v10, 0  ;;  %s1672_s5 = sshll.u32 (!%p141_p9), %s161_s29, 6  ;;  %s1832_s7 = sshll.u32 (!%p141_p9), %s2218_s16, 10 }
  0x12   : > { %vm2315_vm4 = vmor (!%p141_p9), %vm408_vm2, %vm409_vm3  ;;  %s2505_s11 = scalar_lea.hbm (!%p141_p9), %s2558_s3, %s1832_s7  ;;  %s2174_s19 = smov (!%p141_p9), [#allocation2]  }
  0x13   : > { %s2114_s20 = sshll.u32 (!%p141_p9), %s2174_s19, 4  ;;  %s2115_s20 = int_to_ptr.vmem [resolvable:$false] %s2114_s20 }
  0x14   : > { %s2116_s24 = scalar_lea.vmem (!%p141_p9), %s2115_s20, 2048 }
  0x15   : > { %s165_s30 = scalar_select %p164_p10, %s2218_s16, 1 }
  0x16   : > { %s2514_s16 = scalar_lea.sflag [#allocation3], %s161_s29 }
  0x17   : > { %s2044_s6 = smul.u32 288, %s165_s30 }
  0x19   : > { %s2275_s9 = scalar_lea.vmem %s2555_s0, %s2044_s6  ;;  %s2493_s6 = scalar_lea.vmem [#allocation2], %s1672_s5 }
  0x1a   : > { %v2086_v8 = vld [vmem:[%s2275_s9 + $0x48] ss:$8 sps:$4 sm:$0xff]   ;;  %v2087_v11 = vld [vmem:[%s2275_s9 + $0xd8] ss:$8 sps:$4 sm:$0xff]   ;;  %v1743_v19 = vld [vmem:[%s2275_s9 + $0x94] sm:$0x1] }
  0x1b   : > { %1880 = vmatprep.mubr.msk.bf16.mxu1 %vm210_vm1, %v2086_v8  ;;  %v2088_v12 = vld [vmem:[%s2275_s9 + $0x58] ss:$8 sps:$4 sm:$0xff]   ;;  %1920 = vmatprep.mubr.msk.bf16.mxu0 %vm210_vm1, %v2087_v11  ;;  %v2089_v13 = vld [vmem:[%s2275_s9 + $0xe8] ss:$8 sps:$4 sm:$0xff]   ;;  %v1745_v21 = vld [vmem:[%s2275_s9 + $0x9c] sm:$0x1] }
  0x1c   : > { %1881 = vmatmul.mubr.msk.bf16.vlgmr.msra.gmra.mrb[0].mxu1 %vm210_vm1, %v2088_v12  ;;  %v2090_v14 = vld [vmem:[%s2275_s9 + $0x68] ss:$8 sps:$4 sm:$0xff]   ;;  %1921 = vmatmul.mubr.msk.bf16.vlgmr.msra.gmra.mrb[0].mxu0 %vm210_vm1, %v2089_v13  ;;  %v2091_v17 = vld [vmem:[%s2275_s9 + $0x78] ss:$8 sps:$4 sm:$0xff]   ;;  %v889_v24 = vshll.u32 %v1743_v19, 16  ;;  %v903_v27 = vshll.u32 %v1745_v21, 16 }
  0x1d   : > { %1889 = vmatpush3.bf16.msra.mxu1 %v325_v6  ;;  %1929 = vmatpush3.bf16.msra.mxu0 %v1018_v7  ;;  %v1742_v18 = vld [vmem:[%s2275_s9 + $0x90] sm:$0xf]  ;;  %v1744_v20 = vld [vmem:[%s2275_s9 + $0x98] sm:$0xf]  ;;  %v1746_v28 = vld [vmem:[%s2275_s9 + $0xa0] sm:$0xf] }
  0x1e   : > { %1884 = vmatprep.mubr.msk.bf16.mxu1 %vm210_vm1, %v2090_v14  ;;  %v880_v22 = vshrl.u32 %v1742_v18, 16  ;;  %v883_v23 = vshll.u32 %v1742_v18, 16  ;;  %v894_v25 = vshrl.u32 %v1744_v20, 16  ;;  %2041 = vmatprep.subr.msk.bf16.mxu0 %vm223_vm0, %v1775_v9  ;;  %v897_v26 = vshll.u32 %v1744_v20, 16  ;;  %v1747_v29 = vld [vmem:[%s2275_s9 + $0xa4] sm:$0x1] }
  0x1f   : > { %2036 = vmatprep.subr.msk.bf16.mxu1 %vm223_vm0, %v1699_v10  ;;  %v891_v32 = vrot.slane %v889_v24, 5  ;;  %v1748_v34 = vld [vmem:[%s2275_s9 + $0xa8] sm:$0xf]  ;;  %v905_v36 = vrot.slane %v903_v27, 5  ;;  %v1749_v37 = vld [vmem:[%s2275_s9 + $0xac] sm:$0x1] }
  0x20   : > { %v882_v30 = vrot.slane %v880_v22, 4  ;;  %v885_v31 = vrot.slane %v883_v23, 5  ;;  %v896_v33 = vrot.slane %v894_v25, 4  ;;  %v899_v35 = vrot.slane %v897_v26, 5  ;;  %v2092_v53 = vld [vmem:[%s2275_s9] ss:$8 sps:$4 sm:$0xff]  }
  0x21   : > { %v908_v38 = vshrl.u32 %v1746_v28, 16  ;;  %v911_v39 = vshll.u32 %v1746_v28, 16  ;;  %v917_v41 = vshll.u32 %v1747_v29, 16  ;;  %v922_v42 = vshrl.u32 %v1748_v34, 16  ;;  %v2093_v59 = vld [vmem:[%s2275_s9 + $0x10] ss:$8 sps:$4 sm:$0xff]  }
  0x22   : > { %v886_v40 = vor.u32 %v885_v31, %v882_v30  ;;  %v925_v43 = vshll.u32 %v1748_v34, 16  ;;  %v900_v45 = vor.u32 %v899_v35, %v896_v33  ;;  %v931_v48 = vshll.u32 %v1749_v37, 16  ;;  %v1750_v60 = vld [vmem:[%s2275_s9 + $0xb0] sm:$0xf]  ;;  %v1751_v61 = vld [vmem:[%s2275_s9 + $0xb4] sm:$0x1] }
  0x23   : > { %v910_v46 = vrot.slane %v908_v38, 4  ;;  %v913_v47 = vrot.slane %v911_v39, 5  ;;  %v919_v50 = vrot.slane %v917_v41, 5  ;;  %v924_v51 = vrot.slane %v922_v42, 4  ;;  %v1752_v0 = vld [vmem:[%s2275_s9 + $0xb8] sm:$0xf] }
  0x24   : > { %1885 = vmatmul.mubr.msk.bf16.gmra.mrb[4].mxu1 %vm210_vm1, %v2091_v17  ;;  %v887_v49 = vrot.slane %v886_v40, 4  ;;  %v927_v52 = vrot.slane %v925_v43, 5  ;;  %v901_v54 = vrot.slane %v900_v45, 4  ;;  %v933_v56 = vrot.slane %v931_v48, 5  ;;  %v1753_v2 = vld [vmem:[%s2275_s9 + $0xbc] sm:$0x1] }
  0x25   : > { %v914_v55 = vor.u32 %v913_v47, %v910_v46  ;;  %1890 = vmatprep.mubr.msk.bf16.mxu1 %vm210_vm1, %v2092_v53  ;;  %v936_v4 = vshrl.u32 %v1750_v60, 16  ;;  %v939_v7 = vshll.u32 %v1750_v60, 16  ;;  %v945_v8 = vshll.u32 %v1751_v61, 16  ;;  %v1754_v9 = vld [vmem:[%s2275_s9 + $0xc0] sm:$0xf]  ;;  %s1606_s8 = sshll.u32 %s2493_s6, 4  ;;  %s2507_s8 = int_to_ptr.vmem [resolvable:$true] %s1606_s8 }
  0x26   : > { %v892_v57 = vsel %vm2315_vm4, %v887_v49, %v891_v32  ;;  %v928_v58 = vor.u32 %v927_v52, %v924_v51  ;;  %v906_v62 = vsel %vm2315_vm4, %v901_v54, %v905_v36  ;;  %v2334_v10 = vld [vmem:[%s2556_s1 + $0x6] sm:$0x3]  ;;  %v950_v13 = vshrl.u32 %v1752_v0, 16  ;;  %v1755_v17 = vld [vmem:[%s2275_s9 + $0xc4] sm:$0x1]  ;;  %s2110_s17 = scalar_lea.vmem %s2507_s8, 1024  ;;  %p2117_p0 = scmp.lt.s32.totalorder %s2507_s8, %s2115_s20 }
  0x27   : > { %v915_v63 = vrot.slane %v914_v55, 4  ;;  %v1759_v5 = vcombine.low %v892_v57, %v906_v62  ;;  %v938_v12 = vrot.slane %v936_v4, 4  ;;  %v953_v14 = vshll.u32 %v1752_v0, 16  ;;  %v1756_v22 = vld [vmem:[%s2275_s9 + $0xc8] sm:$0xf]  ;;  %p2111_p11 = scmp.ne.s32.totalorder %s2507_s8, %s2110_s17  ;;  %p2118_p1 = scmp.lt.s32.totalorder %s2116_s24, %s2110_s17 }
  0x28   : > { %v929_v6 = vrot.slane %v928_v58, 4  ;;  %v941_v19 = vrot.slane %v939_v7, 5  ;;  %v947_v20 = vrot.slane %v945_v8, 5  ;;  %v959_v21 = vshll.u32 %v1753_v2, 16  ;;  %v2346_v23 = vld [vmem:[%s2556_s1 + $0xe] sm:$0x3] }
  0x29   : > { %v920_v11 = vsel %vm2315_vm4, %v915_v63, %v919_v50  ;;  %1930 = vmatprep.mubr.msk.bf16.mxu0 %vm210_vm1, %v1759_v5  ;;  %v952_v25 = vrot.slane %v950_v13, 4  ;;  %v955_v26 = vrot.slane %v953_v14, 5  ;;  %v1757_v27 = vld [vmem:[%s2275_s9 + $0xcc] sm:$0x1]  ;;  %v964_v28 = vshrl.u32 %v1754_v9, 16  ;;  %p2112_p12 = pnand %p2111_p11, %p2235_p5  ;;  %p2119_p2 = por %p2118_p1, %p2117_p0 }
  0x2a   : > { %v934_v18 = vsel %vm2315_vm4, %v929_v6, %v933_v56  ;;  %v942_v29 = vor.u32 %v941_v19, %v938_v12  ;;  %v961_v30 = vrot.slane %v959_v21, 5  ;;  %v967_v31 = vshll.u32 %v1754_v9, 16  ;;  %v2096_v53 = vld [vmem:[%s2275_s9 + $0x8] ss:$8 sps:$4 sm:$0xff]   ;;  %v392_v54 = vld [vmem:[%s2275_s9] sm:$0xf] }
  0x2b   : > { %v1760_v24 = vcombine.low %v920_v11, %v934_v18  ;;  %v973_v32 = vshll.u32 %v1755_v17, 16  ;;  %v956_v33 = vor.u32 %v955_v26, %v952_v25  ;;  %v966_v34 = vrot.slane %v964_v28, 4  ;;  %v393_v56 = vld [vmem:[%s2275_s9 + $0x4] sm:$0x1]  ;;  %v394_v57 = vld [vmem:[%s2275_s9 + $0x8] sm:$0xf]  ;;  %p2113_p13 = pneg %p2112_p12 }
  0x2c   : > { %1891 = vmatmul.mubr.msk.bf16.vlgmr.msra.gmra.mrb[0].mxu1 %vm210_vm1, %v2093_v59  ;;  %v978_v35 = vshrl.u32 %v1756_v22, 16  ;;  %v981_v36 = vshll.u32 %v1756_v22, 16  ;;  %v943_v37 = vrot.slane %v942_v29, 4  ;;  %v969_v38 = vrot.slane %v967_v31, 5  ;;  %v395_v58 = vld [vmem:[%s2275_s9 + $0xc] sm:$0x1] }
  0x2d   : > { %1899 = vmatpush3.bf16.msra.mxu1 %v2298_v16  ;;  %1931 = vmatmul.mubr.msk.bf16.vlgmr.msra.gmra.mrb[0].mxu0 %vm210_vm1, %v1760_v24  ;;  %v987_v39 = vshll.u32 %v1757_v27, 16  ;;  %v2094_v16 = vld [vmem:[%s2275_s9 + $0x20] ss:$8 sps:$4 sm:$0xff]   ;;  %v957_v40 = vrot.slane %v956_v33, 4  ;;  %v975_v46 = vrot.slane %v973_v32, 5  ;;  %v412_v60 = vshrl.u32 %v392_v54, 16  ;;  %p2120_p3 = pnand %p2119_p2, %p2113_p13 }
  0x2e   : > { %2037 = vmatprep.subr.msk.bf16.mxu1 %vm223_vm0, %v2334_v10  ;;  %1939 = vmatpush3.bf16.msra.mxu0 %v2295_v15  ;;  %v980_v41 = vrot.slane %v978_v35, 4  ;;  %v983_v42 = vrot.slane %v981_v36, 5  ;;  %v948_v43 = vsel %vm2315_vm4, %v943_v37, %v947_v20  ;;  %v970_v45 = vor.u32 %v969_v38, %v966_v34  ;;  %v2095_v15 = vld [vmem:[%s2275_s9 + $0x30] ss:$8 sps:$4 sm:$0xff]   ;;  %v397_v6 = vld [vmem:[%s2275_s9 + $0x14] sm:$0x1] }
  0x2f   : > { %2042 = vmatprep.subr.msk.bf16.mxu0 %vm223_vm0, %v2346_v23  ;;  %1894 = vmatprep.mubr.msk.bf16.mxu1 %vm210_vm1, %v2094_v16  ;;  %v962_v47 = vsel %vm2315_vm4, %v957_v40, %v961_v30  ;;  %v989_v49 = vrot.slane %v987_v39, 5  ;;  %v415_v61 = vshll.u32 %v392_v54, 16  ;;  %v421_v62 = vshll.u32 %v393_v56, 16  ;;  %v396_v63 = vld [vmem:[%s2275_s9 + $0x10] sm:$0xf] }
  0x30   : > { %v984_v48 = vor.u32 %v983_v42, %v980_v41  ;;  %v1761_v50 = vcombine.low %v948_v43, %v962_v47  ;;  %v971_v51 = vrot.slane %v970_v45, 4  ;;  %v426_v2 = vshrl.u32 %v394_v57, 16  ;;  %v398_v11 = vld [vmem:[%s2275_s9 + $0x18] sm:$0xf]  ;;  %v399_v18 = vld [vmem:[%s2275_s9 + $0x1c] sm:$0x1] }
  0x31   : > { %v429_v4 = vshll.u32 %v394_v57, 16  ;;  %v435_v5 = vshll.u32 %v395_v58, 16  ;;  %v414_v7 = vrot.slane %v412_v60, 4  ;;  %v417_v8 = vrot.slane %v415_v61, 5  ;;  %v2097_v29 = vld [vmem:[%s2275_s9 + $0x18] ss:$8 sps:$4 sm:$0xff]  }
  0x32   : > { %v985_v52 = vrot.slane %v984_v48, 4  ;;  %1934 = vmatprep.mubr.msk.bf16.mxu0 %vm210_vm1, %v1761_v50  ;;  %v976_v55 = vsel %vm2315_vm4, %v971_v51, %v975_v46  ;;  %v423_v9 = vrot.slane %v421_v62, 5  ;;  %v440_v12 = vshrl.u32 %v396_v63, 16  ;;  %v2098_v37 = vld [vmem:[%s2275_s9 + $0x28] ss:$8 sps:$4 sm:$0xff]  }
  0x33   : > { %v428_v13 = vrot.slane %v426_v2, 4  ;;  %v431_v14 = vrot.slane %v429_v4, 5  ;;  %v437_v17 = vrot.slane %v435_v5, 5  ;;  %v443_v19 = vshll.u32 %v396_v63, 16  ;;  %v400_v40 = vld [vmem:[%s2275_s9 + $0x20] sm:$0xf] }
  0x34   : > { %1895 = vmatmul.mubr.msk.bf16.gmra.mrb[4].mxu1 %vm210_vm1, %v2095_v15  ;;  %v990_v59 = vsel %vm2315_vm4, %v985_v52, %v989_v49  ;;  %v418_v20 = vor.u32 %v417_v8, %v414_v7  ;;  %v442_v21 = vrot.slane %v440_v12, 4  ;;  %v449_v22 = vshll.u32 %v397_v6, 16  ;;  %v401_v45 = vld [vmem:[%s2275_s9 + $0x24] sm:$0x1]  ;;  %v402_v46 = vld [vmem:[%s2275_s9 + $0x28] sm:$0xf] }
  0x35   : > { %v1762_v0 = vcombine.low %v976_v55, %v990_v59  ;;  %v454_v24 = vshrl.u32 %v398_v11, 16  ;;  %v432_v25 = vor.u32 %v431_v14, %v428_v13  ;;  %v445_v26 = vrot.slane %v443_v19, 5  ;;  %v403_v48 = vld [vmem:[%s2275_s9 + $0x2c] sm:$0x1]  ;;  %v404_v55 = vld [vmem:[%s2275_s9 + $0x30] sm:$0xf] }
  0x36   : > { %v457_v27 = vshll.u32 %v398_v11, 16  ;;  %v463_v28 = vshll.u32 %v399_v18, 16  ;;  %v1256_v30 = vsel %vm223_vm0, %v2346_v23, 0  ;;  %v419_v31 = vrot.slane %v418_v20, 4  ;;  %v2393_v23 = vld [vmem:[%s2556_s1 + $0x10] sm:$0x3] }
  0x37   : > { %1935 = vmatmul.mubr.msk.bf16.gmra.mrb[4].mxu0 %vm210_vm1, %v1762_v0  ;;  %v451_v32 = vrot.slane %v449_v22, 5  ;;  %v456_v33 = vrot.slane %v454_v24, 4  ;;  %v433_v34 = vrot.slane %v432_v25, 4  ;;  %v446_v35 = vor.u32 %v445_v26, %v442_v21  ;;  %v405_v60 = vld [vmem:[%s2275_s9 + $0x34] sm:$0x1] }
  0x38   : > { %1940 = vmatprep.mubr.msk.bf16.mxu0 %vm210_vm1, %v2096_v53  ;;  %v459_v36 = vrot.slane %v457_v27, 5  ;;  %v424_v38 = vsel %vm2315_vm4, %v419_v31, %v423_v9  ;;  %v465_v39 = vrot.slane %v463_v28, 5  ;;  %v669_v16 = vsel %vm223_vm0, %v2334_v10, 0  ;;  %v2099_v62 = vld [vmem:[%s2275_s9 + $0x38] ss:$8 sps:$4 sm:$0xff]  }
  0x39   : > { %v438_v41 = vsel %vm2315_vm4, %v433_v34, %v437_v17  ;;  %v447_v42 = vrot.slane %v446_v35, 4  ;;  %v468_v15 = vshrl.u32 %v400_v40, 16  ;;  %v471_v49 = vshll.u32 %v400_v40, 16  ;;  %v406_v0 = vld [vmem:[%s2275_s9 + $0x38] sm:$0xf] }
  0x3a   : > { %v460_v43 = vor.u32 %v459_v36, %v456_v33  ;;  %v1700_v47 = vcombine.low %v424_v38, %v438_v41  ;;  %v477_v10 = vshll.u32 %v401_v45, 16  ;;  %v482_v50 = vshrl.u32 %v402_v46, 16  ;;  %v407_v2 = vld [vmem:[%s2275_s9 + $0x3c] sm:$0x1]  ;;  %v2100_v14 = vld [vmem:[%s2275_s9 + $0x50] ss:$8 sps:$4 sm:$0xff]  }
  0x3b   : > { %v452_v51 = vsel %vm2315_vm4, %v447_v42, %v451_v32  ;;  %v470_v53 = vrot.slane %v468_v15, 4  ;;  %v485_v54 = vshll.u32 %v402_v46, 16  ;;  %v473_v56 = vrot.slane %v471_v49, 5  ;;  %v2101_v35 = vld [vmem:[%s2275_s9 + $0x60] ss:$8 sps:$4 sm:$0xff]  }
  0x3c   : > { %v461_v52 = vrot.slane %v460_v43, 4  ;;  %1900 = vmatprep.mubr.msk.bf16.mxu1 %vm210_vm1, %v1700_v47  ;;  %v479_v57 = vrot.slane %v477_v10, 5  ;;  %v484_v58 = vrot.slane %v482_v50, 4  ;;  %v491_v59 = vshll.u32 %v403_v48, 16  ;;  %v1802_v40 = vld [vmem:[%s2275_s9 + $0xc] sm:$0x1] }
  0x3d   : > { %v487_v63 = vrot.slane %v485_v54, 5  ;;  %v496_v4 = vshrl.u32 %v404_v55, 16  ;;  %v474_v6 = vor.u32 %v473_v56, %v470_v53  ;;  %v499_v8 = vshll.u32 %v404_v55, 16  ;;  %v1803_v41 = vld [vmem:[%s2275_s9 + $0x10] sm:$0xf] }
  0x3e   : > { %v466_v61 = vsel %vm2315_vm4, %v461_v52, %v465_v39  ;;  %v493_v7 = vrot.slane %v491_v59, 5  ;;  %v505_v12 = vshll.u32 %v405_v60, 16  ;;  %v510_v13 = vshrl.u32 %v406_v0, 16  ;;  %v2104_v39 = vld [vmem:[%s2275_s9 + $0x70] ss:$8 sps:$4 sm:$0xff]  }
  0x3f   : > { %1941 = vmatmul.mubr.msk.bf16.vlgmr.msra.gmra.mrb[0].mxu0 %vm210_vm1, %v2097_v29  ;;  %v1701_v5 = vcombine.low %v452_v51, %v466_v61  ;;  %v488_v9 = vor.u32 %v487_v63, %v484_v58  ;;  %v498_v11 = vrot.slane %v496_v4, 4  ;;  %v475_v17 = vrot.slane %v474_v6, 4  ;;  %v1804_v42 = vld [vmem:[%s2275_s9 + $0x14] sm:$0x1]  ;;  %v1805_v48 = vld [vmem:[%s2275_s9 + $0x18] sm:$0xf] }
  0x40   : > { %1949 = vmatpush3.bf16.msra.mxu0 %v1256_v30  ;;  %1944 = vmatprep.mubr.msk.bf16.mxu0 %vm210_vm1, %v2098_v37  ;;  %v501_v18 = vrot.slane %v499_v8, 5  ;;  %v513_v19 = vshll.u32 %v406_v0, 16  ;;  %v519_v20 = vshll.u32 %v407_v2, 16  ;;  %v512_v22 = vrot.slane %v510_v13, 4  ;;  %v2102_v37 = vld [vmem:[%s2275_s9 + $0x90] ss:$8 sps:$4 sm:$0xff]  }
  0x41   : > { %2043 = vmatprep.subr.msk.bf16.mxu0 %vm223_vm0, %v2393_v23  ;;  %1901 = vmatmul.mubr.msk.bf16.vlgmr.msra.gmra.mrb[0].mxu1 %vm210_vm1, %v1701_v5  ;;  %v489_v21 = vrot.slane %v488_v9, 4  ;;  %v480_v24 = vsel %vm2315_vm4, %v475_v17, %v479_v57  ;;  %v507_v26 = vrot.slane %v505_v12, 5  ;;  %v1486_v34 = vsel %vm223_vm0, %v2393_v23, 0  ;;  %v1806_v50 = vld [vmem:[%s2275_s9 + $0x1c] sm:$0x1] }
  0x42   : > { %1909 = vmatpush3.bf16.msra.mxu1 %v669_v16  ;;  %v502_v25 = vor.u32 %v501_v18, %v498_v11  ;;  %v515_v27 = vrot.slane %v513_v19, 5  ;;  %v521_v32 = vrot.slane %v519_v20, 5  ;;  %v1801_v16 = vld [vmem:[%s2275_s9 + $0x8] sm:$0xf]  ;;  %v1357_v23 = vshll.u32 %v1802_v40, 16 }
  0x43   : > { %2039 = vmatprep.subr.msk.bf16.mxu1 %vm223_vm0, %v2251_v1  ;;  %v494_v28 = vsel %vm2315_vm4, %v489_v21, %v493_v7  ;;  %v1348_v43 = vshrl.u32 %v1801_v16, 16  ;;  %v1351_v45 = vshll.u32 %v1801_v16, 16  ;;  %v1362_v46 = vshrl.u32 %v1803_v41, 16  ;;  %v1807_v51 = vld [vmem:[%s2275_s9 + $0x20] sm:$0xf] }
  0x44   : > { %v1702_v29 = vcombine.low %v480_v24, %v494_v28  ;;  %v503_v30 = vrot.slane %v502_v25, 4  ;;  %v516_v31 = vor.u32 %v515_v27, %v512_v22  ;;  %v1365_v15 = vshll.u32 %v1803_v41, 16  ;;  %v2103_v52 = vld [vmem:[%s2275_s9 + $0xa0] ss:$8 sps:$4 sm:$0xff]   ;;  %v1808_v58 = vld [vmem:[%s2275_s9 + $0x24] sm:$0x1] }
  0x45   : > { %v1371_v47 = vshll.u32 %v1804_v42, 16  ;;  %v1350_v49 = vrot.slane %v1348_v43, 4  ;;  %v1353_v10 = vrot.slane %v1351_v45, 5  ;;  %v2105_v53 = vld [vmem:[%s2275_s9 + $0x80] ss:$8 sps:$4 sm:$0xff]   ;;  %v1359_v54 = vrot.slane %v1357_v23, 5 }
  0x46   : > { %1904 = vmatprep.mubr.msk.bf16.mxu1 %vm210_vm1, %v1702_v29  ;;  %v508_v1 = vsel %vm2315_vm4, %v503_v30, %v507_v26  ;;  %v517_v33 = vrot.slane %v516_v31, 4  ;;  %v1364_v55 = vrot.slane %v1362_v46, 4  ;;  %v1367_v56 = vrot.slane %v1365_v15, 5  ;;  %v2106_v5 = vld [vmem:[%s2275_s9 + $0xb0] ss:$8 sps:$4 sm:$0xff]  }
  0x47   : > { %1945 = vmatmul.mubr.msk.bf16.gmra.mrb[4].mxu0 %vm210_vm1, %v2099_v62  ;;  %v1373_v57 = vrot.slane %v1371_v47, 5  ;;  %v1354_v59 = vor.u32 %v1353_v10, %v1350_v49  ;;  %v1376_v60 = vshrl.u32 %v1805_v48, 16  ;;  %v1379_v61 = vshll.u32 %v1805_v48, 16  ;;  %v1809_v17 = vld [vmem:[%s2275_s9 + $0x28] sm:$0xf] }
  0x48   : > { %1950 = vmatprep.mubr.msk.bf16.mxu0 %vm210_vm1, %v2100_v14  ;;  %v522_v36 = vsel %vm2315_vm4, %v517_v33, %v521_v32  ;;  %v1385_v62 = vshll.u32 %v1806_v50, 16  ;;  %v1368_v63 = vor.u32 %v1367_v56, %v1364_v55  ;;  %v1390_v0 = vshrl.u32 %v1807_v51, 16  ;;  %v1810_v20 = vld [vmem:[%s2275_s9 + $0x2c] sm:$0x1]  ;;  %v1811_v21 = vld [vmem:[%s2275_s9 + $0x30] sm:$0xf] }
  0x49   : > { %v1703_v38 = vcombine.low %v508_v1, %v522_v36  ;;  %v1393_v2 = vshll.u32 %v1807_v51, 16  ;;  %v1399_v4 = vshll.u32 %v1808_v58, 16  ;;  %v1355_v6 = vrot.slane %v1354_v59, 4  ;;  %v1812_v22 = vld [vmem:[%s2275_s9 + $0x34] sm:$0x1] }
  0x4a   : > { %v1378_v7 = vrot.slane %v1376_v60, 4  ;;  %v1381_v8 = vrot.slane %v1379_v61, 5  ;;  %v1387_v9 = vrot.slane %v1385_v62, 5  ;;  %v1369_v11 = vrot.slane %v1368_v63, 4  ;;  %v2107_v32 = vld [vmem:[%s2275_s9 + $0xc0] ss:$8 sps:$4 sm:$0xff]  }
  0x4b   : > { %1905 = vmatmul.mubr.msk.bf16.gmra.mrb[4].mxu1 %vm210_vm1, %v1703_v38  ;;  %v1392_v12 = vrot.slane %v1390_v0, 4  ;;  %v1395_v13 = vrot.slane %v1393_v2, 5  ;;  %v1401_v14 = vrot.slane %v1399_v4, 5  ;;  %v1360_v18 = vsel %vm2315_vm4, %v1355_v6, %v1359_v54  ;;  %v1813_v36 = vld [vmem:[%s2275_s9 + $0x38] sm:$0xf] }
  0x4c   : > { %1910 = vmatprep.mubr.msk.bf16.mxu1 %vm210_vm1, %v2102_v37  ;;  %v1382_v19 = vor.u32 %v1381_v8, %v1378_v7  ;;  %v1374_v24 = vsel %vm2315_vm4, %v1369_v11, %v1373_v57  ;;  %v1404_v26 = vshrl.u32 %v1809_v17, 16  ;;  %v1407_v27 = vshll.u32 %v1809_v17, 16  ;;  %v1814_v16 = vld [vmem:[%s2275_s9 + $0x3c] sm:$0x1]  ;;  %v1815_v43 = vld [vmem:[%s2275_s9 + $0x40] sm:$0xf] }
  0x4d   : > { %v1396_v25 = vor.u32 %v1395_v13, %v1392_v12  ;;  %v1818_v28 = vcombine.low %v1360_v18, %v1374_v24  ;;  %v1413_v30 = vshll.u32 %v1810_v20, 16  ;;  %v1418_v31 = vshrl.u32 %v1811_v21, 16  ;;  %v1816_v45 = vld [vmem:[%s2275_s9 + $0x44] sm:$0x1]  ;;  %v2108_v15 = vld [vmem:[%s2275_s9 + $0xf8] ss:$8 sps:$4 sm:$0xff]  }
  0x4e   : > { %v1383_v29 = vrot.slane %v1382_v19, 4  ;;  %v1406_v33 = vrot.slane %v1404_v26, 4  ;;  %v1432_v23 = vshrl.u32 %v1813_v36, 16  ;;  %v1435_v48 = vshll.u32 %v1813_v36, 16  ;;  %v2109_v8 = vld [vmem:[%s2275_s9 + $0x108] ss:$8 sps:$4 sm:$0xff]  }
  0x4f   : > { %1951 = vmatmul.mubr.msk.bf16.vlgmr.msra.gmra.mrb[0].mxu0 %vm210_vm1, %v2101_v35  ;;  %v1397_v1 = vrot.slane %v1396_v25, 4  ;;  %v1421_v35 = vshll.u32 %v1811_v21, 16  ;;  %v1415_v37 = vrot.slane %v1413_v30, 5  ;;  %v1420_v38 = vrot.slane %v1418_v31, 4  ;;  %v1826_v18 = vld [vmem:[%s2557_s2] ss:$0 sm:$0xff] }
  0x50   : > { %1959 = vmatpush3.bf16.msra.mxu0 %v1486_v34  ;;  %1954 = vmatprep.mubr.msk.bf16.mxu0 %vm210_vm1, %v2104_v39  ;;  %v1409_v34 = vrot.slane %v1407_v27, 5  ;;  %v1427_v39 = vshll.u32 %v1812_v22, 16  ;;  %v1441_v49 = vshll.u32 %v1814_v16, 16  ;;  %v1434_v51 = vrot.slane %v1432_v23, 4 }
  0x51   : > { %v1402_v40 = vsel %vm2315_vm4, %v1397_v1, %v1401_v14  ;;  %v1423_v42 = vrot.slane %v1421_v35, 5  ;;  %v1449_v54 = vshll.u32 %v1815_v43, 16  ;;  %v1455_v55 = vshll.u32 %v1816_v45, 16 }
  0x52   : > { %v1410_v41 = vor.u32 %v1409_v34, %v1406_v33  ;;  %v1429_v47 = vrot.slane %v1427_v39, 5  ;;  %v1443_v60 = vrot.slane %v1441_v49, 5 }
  0x53   : > { %1911 = vmatmul.mubr.msk.bf16.vlgmr.msra.gmra.mrb[0].mxu1 %vm210_vm1, %v2103_v52  ;;  %v1424_v50 = vor.u32 %v1423_v42, %v1420_v38  ;;  %v1446_v52 = vshrl.u32 %v1815_v43, 16  ;;  %v1451_v61 = vrot.slane %v1449_v54, 5  ;;  %v1457_v4 = vrot.slane %v1455_v55, 5 }
  0x54   : > { %1969 = vmatpush3.bf16.msra.mxu1 %v2260_v3  ;;  %1914 = vmatprep.mubr.msk.bf16.mxu1 %vm210_vm1, %v2106_v5  ;;  %v1388_v3 = vsel %vm2315_vm4, %v1383_v29, %v1387_v9  ;;  %v1411_v10 = vrot.slane %v1410_v41, 4 }
  0x55   : > { %v1819_v46 = vcombine.low %v1388_v3, %v1402_v40  ;;  %v1425_v57 = vrot.slane %v1424_v50, 4  ;;  %v1448_v58 = vrot.slane %v1446_v52, 4 }
  0x56   : > { %v1416_v56 = vsel %vm2315_vm4, %v1411_v10, %v1415_v37 }
  0x57   : > { %1955 = vmatmul.mubr.msk.bf16.gmra.mrb[4].mxu0 %vm210_vm1, %v2105_v53  ;;  %v1437_v53 = vrot.slane %v1435_v48, 5  ;;  %v1430_v62 = vsel %vm2315_vm4, %v1425_v57, %v1429_v47  ;;  %v1452_v2 = vor.u32 %v1451_v61, %v1448_v58 }
  0x58   : > { %1960 = vmatprep.mubr.msk.bf16.mxu0 %vm210_vm1, %v1818_v28  ;;  %v1820_v63 = vcombine.low %v1416_v56, %v1430_v62 }
  0x59   : > { %v1438_v59 = vor.u32 %v1437_v53, %v1434_v51  ;;  %v1453_v6 = vrot.slane %v1452_v2, 4 }
  0x5b   : > { %1915 = vmatmul.mubr.msk.bf16.gmra.mrb[4].mxu1 %vm210_vm1, %v2107_v32  ;;  %v1439_v0 = vrot.slane %v1438_v59, 4  ;;  %v1458_v7 = vsel %vm2315_vm4, %v1453_v6, %v1457_v4 }
  0x5c   : > { %1924 = vmatprep.mubr.msk.bf16.mxu1 %vm210_vm1, %v2108_v15 }
  0x5d   : > { %v1444_v5 = vsel %vm2315_vm4, %v1439_v0, %v1443_v60 }
  0x5e   : > { %v1821_v9 = vcombine.low %v1444_v5, %v1458_v7 }
  0x5f   : > { %1961 = vmatmul.mubr.msk.bf16.vlgmr.msra.gmra.mrb[0].mxu0 %vm210_vm1, %v1819_v46 }
  0x60   : > { %1964 = vmatprep.mubr.msk.bf16.mxu0 %vm210_vm1, %v1820_v63 }
  0x67   : > { %1965 = vmatmul.mubr.msk.bf16.gmra.mrb[4].mxu0 %vm210_vm1, %v1821_v9  ;;  %1925 = vmatmul.mubr.msk.bf16.vlgmr.msra.gmra.mrb[4].mxu1 %vm210_vm1, %v2109_v8 }
 0x126   : > { %v1912_v11 = vpop.f32.mrb[0].mxu1 }
 0x127   : > { %v705_v12 = vpop.f32.mrb[1].mxu1 }
 0x128   : > { %v1913_v13 = vpop.f32.mrb[2].mxu1 }
 0x129   : > { %v708_v14 = vpop.f32.mrb[3].mxu1 }
 0x132   : > { %v1962_v17 = vpop.f32.mrb[0].mxu0 }
 0x133   : > { %v1970_v44 = vadd.f32 %v1962_v17, %v1912_v11  ;;  %v1522_v19 = vpop.f32.mrb[1].mxu0 }
 0x134   : > { %v1971_v20 = vadd.f32 %v1522_v19, %v705_v12  ;;  %v1963_v21 = vpop.f32.mrb[2].mxu0 }
 0x135   : > { %v1570_v22 = vadd.f32 %v1970_v44, %v1826_v18  ;;  %v1972_v24 = vadd.f32 %v1963_v21, %v1913_v13  ;;  %v1525_v25 = vpop.f32.mrb[3].mxu0 }
 0x136   : > { %v1568_v26 = vadd.f32 %v1971_v20, %v1826_v18  ;;  %v1973_v27 = vadd.f32 %v1525_v25, %v708_v14 }
 0x137   : > { %v1578_v28 = vmax.f32 %v1570_v22, 0.0  ;;  %v1571_v29 = vadd.f32 %v1972_v24, %v1826_v18 }
 0x138   : > { %v1576_v30 = vmax.f32 %v1568_v26, 0.0  ;;  %v1569_v31 = vadd.f32 %v1973_v27, %v1826_v18 }
 0x139   : > { %1586 = vst [vmem:[%s2493_s6 + $0x10] sm:$0xff] %v1578_v28  ;;  %v1579_v32 = vmax.f32 %v1571_v29, 0.0 }
 0x13a   : > { %1584 = vst [vmem:[%s2493_s6] sm:$0xff] %v1576_v30  ;;  %v1577_v1 = vmax.f32 %v1569_v31, 0.0  ;;  %v1966_v33 = vpop.f32.mrb[4].mxu0  ;;  %v1926_v35 = vpop.f32.mrb[4].mxu1 }
 0x13b   : > { %1587 = vst [vmem:[%s2493_s6 + $0x18] sm:$0xff] %v1579_v32  ;;  %v1538_v34 = vpop.f32.mrb[5].mxu0  ;;  %v1974_v3 = vadd.f32 %v1966_v33, %v1926_v35  ;;  %v840_v37 = vpop.f32.mrb[5].mxu1 }
 0x13c   : > { %1585 = vst [vmem:[%s2493_s6 + $0x8] sm:$0xff] %v1577_v1  ;;  %v1967_v36 = vpop.f32.mrb[6].mxu0  ;;  %v1975_v39 = vadd.f32 %v1538_v34, %v840_v37  ;;  %v1927_v16 = vpop.f32.mrb[6].mxu1 }
 0x13d   : > { %v1541_v38 = vpop.f32.mrb[7].mxu0  ;;  %v1574_v40 = vadd.f32 %v1974_v3, %v1826_v18  ;;  %v1976_v41 = vadd.f32 %v1967_v36, %v1927_v16  ;;  %v843_v42 = vpop.f32.mrb[7].mxu1 }
 0x13e   : > { %v1572_v43 = vadd.f32 %v1975_v39, %v1826_v18  ;;  %v1977_v45 = vadd.f32 %v1541_v38, %v843_v42 }
 0x13f   : > { %v1582_v23 = vmax.f32 %v1574_v40, 0.0  ;;  %v1575_v46 = vadd.f32 %v1976_v41, %v1826_v18 }
 0x140   : > { %v1580_v15 = vmax.f32 %v1572_v43, 0.0  ;;  %v1573_v47 = vadd.f32 %v1977_v45, %v1826_v18 }
 0x141   : > { %1590 = vst [vmem:[%s2493_s6 + $0x30] sm:$0xff] %v1582_v23  ;;  %v1583_v48 = vmax.f32 %v1575_v46, 0.0 }
 0x142   : > { %1588 = vst [vmem:[%s2493_s6 + $0x20] sm:$0xff] %v1580_v15  ;;  %v1581_v49 = vmax.f32 %v1573_v47, 0.0 }
 0x143   : > { %1591 = vst [vmem:[%s2493_s6 + $0x38] sm:$0xff] %v1583_v48 }
 0x144   : > { %1589 = vst [vmem:[%s2493_s6 + $0x28] sm:$0xff] %v1581_v49 }
 0x145   : > { %2123 = shalt.err (!%p2120_p3)
}
 0x146   : > { %s2124_s25 = scalar_lea.hbm %s2505_s11, 1024  ;;  %s2128_s28 = scalar_lea.hbm %s2558_s3, 2048 }
 0x147   : > { %p2125_p4 = scmp.ne.s32.totalorder %s2505_s11, %s2124_s25  ;;  %p2129_p9 = scmp.lt.u32.totalorder %s2505_s11, %s2558_s3 }
 0x148   : > { %p2130_p10 = scmp.lt.u32.totalorder %s2128_s28, %s2124_s25  ;;  %p2132_p12 = scmp.lt.u32.totalorder %s2124_s25, %s2505_s11 }
 0x149   : > { %p2126_p7 = pnand %p2125_p4, %p2235_p5 }
 0x14a   : > { %p2131_p11 = por %p2130_p10, %p2129_p9 }
 0x14b   : > { %p2127_p8 = pneg %p2126_p7 }
 0x14c   : > { %p2133_p13 = por %p2132_p12, %p2131_p11 }
 0x14e   : > { %p2134_p0 = pnand %p2133_p13, %p2127_p8 }
 0x150   : > { %2137 = shalt.err (!%p2134_p0)
}
 0x151   : > { %s2175_s4 = smov 128   ;;  %s2176_s5 = smov 8  }
 0x152   : > { %2045 = dma.vmem_to_hbm [thread:$0]  (%p2235_p5), %s2507_s8, 1024, %s2505_s11, %s2514_s16, %s2175_s4, %s2175_s4, %s2176_s5  }
 0x153 PF: > { %p2051_p1 = scmp.ge.s32.totalorder %s2172_s15, 2  ;;  %s1621_s6 = sand.u32 1, %s2160_s12  }
 0x154   : > { %s1622_s7 = scalar_lea.sflag [#allocation3], %s1621_s6 }
 0x155   : > { %p2048_p2 = pnand %p2051_p1, %p2239_p6 }
 0x157   : > { %2155 = dma.done.wait (!%p2048_p2), %s1622_s7, 1024  }
 0x158   : > { %2157 = vsyncadd (!%p2048_p2), %s1622_s7, 4294966272  ;;  %p13_p3 = scmp.ge.s32.totalorder %s2222_s18, 4   ;;  %s2563_s12 = smov %s2164_s13 }
 0x159   : > { %s2564_s13 = smov %s2168_s14  ;;  %s2565_s14 = smov %s2233_s21 }
 0x15a   : > { %s2566_s15 = smov %s2222_s18  ;;  %15 = sbr.rel (!%p13_p3) target bundleno = 3 (0x3), region = 80 }
 0x161   :  { %1627 = vsyncpa [#allocation3], 1 }
 0x162   :  { %1629 = vsyncpa [#allocation3 + $0x1], 1 }

</bundles_post_ra>
